<compile_context>
chip_gen: v6e
topology: v6e:2x2x1
jax: 0.10.0
libtpu: 0.0.40
codegen_flags: <defaults>
</compile_context>

<pallas_src>
import functools

import jax
import jax.numpy as jnp
from jax import lax
from jax.experimental import pallas as pl
from jax.experimental.pallas import tpu as pltpu


# ----------------------------------------------------------------------------
# Kernels
# ----------------------------------------------------------------------------

def _conv_kernel(x_ref, w_ref, b_ref, o_ref):
    # x_ref : (1, C, ts)   VMEM   (spatial tile, lane-dense last dim)
    # w_ref : (1, C)       VMEM   (1x1 conv weight row)
    # b_ref : (1, 1)       SMEM   (conv bias scalar)
    # o_ref : (1, 1, ts)
    y = jnp.dot(w_ref[...], x_ref[0], preferred_element_type=jnp.float32)  # (1, ts)
    o_ref[0] = (y + b_ref[0, 0]).astype(o_ref.dtype)


def _resize_kernel(w_ref, b_ref, x_ref, ah_ref, awt_ref, o_ref, acc_ref, *, C, tc):
    # Fused 1x1-conv + bilinear resize (align_corners=True), C-reduction grid.
    # w_ref  : (C,)            SMEM   per-channel conv weights
    # b_ref  : (1, 1)          SMEM   conv bias scalar
    # x_ref  : (1, tc, H, W)   VMEM   channel block of x (natural NCHW layout)
    # ah_ref : (Hout, H)       VMEM   row interpolation matrix (constant index)
    # awt_ref: (W, Wout)       VMEM   column interpolation matrix, transposed
    # o_ref  : (1, Hout, Wout)
    # acc_ref: (H, W) f32 scratch accumulator over the C axis
    c_blk = pl.program_id(1)

    @pl.when(c_blk == 0)
    def _init():
        acc_ref[...] = jnp.zeros_like(acc_ref)

    c0 = c_blk * tc
    # Guard the (possibly partial) last channel block: never touch padded
    # channels of the x block nor read the weight vector out of bounds.
    n_valid = jnp.minimum(tc, C - c0)

    def _body(i, carry):
        acc_ref[...] += w_ref[c0 + i] * x_ref[0, i].astype(jnp.float32)
        return carry

    lax.fori_loop(0, n_valid, _body, 0)

    @pl.when(c_blk == pl.num_programs(1) - 1)
    def _finalize():
        # Tiny interp matmuls on the C-reduced (H, W) map.
        t = jnp.dot(ah_ref[...], acc_ref[...],
                    preferred_element_type=jnp.float32)          # (Hout, W)
        z = jnp.dot(t, awt_ref[...],
                    preferred_element_type=jnp.float32)          # (Hout, Wout)
        # Bias after interp is exact because interp rows/cols sum to 1.
        o_ref[0] = (z + b_ref[0, 0]).astype(o_ref.dtype)


# ----------------------------------------------------------------------------
# Helpers
# ----------------------------------------------------------------------------

def _interp_matrix(n_out, n_in, dtype=jnp.float32):
    """Bilinear interpolation matrix M (n_out, n_in), align_corners=True:
       out = M @ in along that axis.  NOTE: every row sums to 1 (also in the
       degenerate n_in==1 / n_out==1 cases); the kernels rely on this to add
       the conv bias *after* the interpolation."""
    if n_out == 1 or n_in == 1:
        src = jnp.zeros((n_out,), dtype=jnp.float32)
    else:
        src = jnp.arange(n_out, dtype=jnp.float32) * ((n_in - 1) / (n_out - 1))
    lo = jnp.clip(jnp.floor(src).astype(jnp.int32), 0, n_in - 1)
    hi = jnp.clip(lo + 1, 0, n_in - 1)
    frac = src - lo.astype(jnp.float32)
    rows = jnp.arange(n_out)
    m = jnp.zeros((n_out, n_in), dtype=dtype)
    m = m.at[rows, lo].add((1.0 - frac).astype(dtype))
    m = m.at[rows, hi].add(frac.astype(dtype))
    return m


def _pad_to(n, m):
    n = max(int(n), 1)
    return ((n + m - 1) // m) * m


def _tile_bytes(rows, cols, itemsize=4):
    """VMEM bytes of one (rows, cols) f32 tile after (8, 128) padding."""
    return _pad_to(rows, 8) * _pad_to(cols, 128) * itemsize


def _vmem_limit(needed_bytes):
    """Generation-aware VMEM request: leave headroom for compiler scratch and
    pipeline buffers (v7x has 64 MiB/TC vs 128 MiB on v5e/v6e)."""
    cap = 128 << 20
    try:
        cap = int(pltpu.get_tpu_info().vmem_capacity_bytes)
    except Exception:
        pass
    soft_cap = int(cap * 0.55)
    req = needed_bytes + (2 << 20)
    return int(min(max(req, 16 << 20), max(soft_cap, needed_bytes + (1 << 20))))


# ----------------------------------------------------------------------------
# Wrappers
# ----------------------------------------------------------------------------

def _conv_only(x, w_row, b, max_block_bytes=None):
    """1x1 conv only (no resize).  Lane-dense layout: x -> (N, C, H*W)."""
    N, C, H, W = x.shape
    HW = H * W
    x2 = x.reshape(N, C, HW)                     # free view

    # Spatial tile from a VMEM budget (double-buffered by the pipeline).
    budget = int(max_block_bytes) if max_block_bytes else (8 << 20)
    if C * _pad_to(HW, 128) * 4 <= budget:
        ts = HW
    else:
        ts = max(128, (budget // (C * 4)) // 128 * 128)
        ts = min(ts, HW)
    num_s = pl.cdiv(HW, ts)

    needed = (2 * _tile_bytes(C, ts)             # x, double-buffered
              + 2 * _tile_bytes(1, C)            # weight row
              + 2 * _tile_bytes(1, ts))          # output
    cost = pl.CostEstimate(
        flops=2 * N * C * HW, transcendentals=0,
        bytes_accessed=4 * (N * C * HW + N * HW + C + 1))

    out = pl.pallas_call(
        _conv_kernel,
        out_shape=jax.ShapeDtypeStruct((N, 1, HW), x.dtype),
        grid_spec=pltpu.PrefetchScalarGridSpec(
            num_scalar_prefetch=0,
            grid=(N, num_s),
            in_specs=[
                pl.BlockSpec((1, C, ts), lambda n, s: (n, 0, s)),
                pl.BlockSpec((1, C), lambda n, s: (0, 0)),
                pl.BlockSpec(memory_space=pltpu.MemorySpace.SMEM),
            ],
            out_specs=pl.BlockSpec((1, 1, ts), lambda n, s: (n, 0, s)),
        ),
        compiler_params=pltpu.CompilerParams(
            dimension_semantics=("parallel", "parallel"),
            vmem_limit_bytes=_vmem_limit(needed)),
        cost_estimate=cost,
    )(x2, w_row, b)
    return out.reshape(N, 1, H, W)


def _conv_resize(x, w_vec, b, Hout, Wout, max_block_bytes=None):
    """Fused 1x1 conv + bilinear (align_corners=True) resize.

    x is streamed ONCE in channel blocks; the small interp matrices are held
    resident (constant index maps), and the conv weights live in SMEM."""
    N, C, H, W = x.shape

    ah = _interp_matrix(Hout, H)                 # (Hout, H)
    awt = _interp_matrix(Wout, W).T              # (W, Wout)

    # Channel tile from a VMEM budget.  tc is a leading block dim, so it has
    # no (8,128) constraint; a partial last block is handled in-kernel.
    per_ch = _pad_to(H, 8) * _pad_to(W, 128) * 4
    budget = int(max_block_bytes) if max_block_bytes else (8 << 20)
    tc = int(min(C, max(1, budget // per_ch)))
    num_c = pl.cdiv(C, tc)

    needed = (2 * tc * per_ch                    # x block, double-buffered
              + 2 * _tile_bytes(Hout, H)         # A_h
              + 2 * _tile_bytes(W, Wout)         # A_w^T
              + 2 * _tile_bytes(Hout, Wout)      # output
              + _tile_bytes(H, W))               # accumulator scratch
    cost = pl.CostEstimate(
        flops=2 * N * (C * H * W + Hout * H * W + Hout * W * Wout),
        transcendentals=0,
        bytes_accessed=4 * (N * C * H * W + Hout * H + W * Wout
                            + N * Hout * Wout + C + 1))

    kernel = functools.partial(_resize_kernel, C=C, tc=tc)

    out = pl.pallas_call(
        kernel,
        out_shape=jax.ShapeDtypeStruct((N, Hout, Wout), x.dtype),
        grid_spec=pltpu.PrefetchScalarGridSpec(
            num_scalar_prefetch=0,
            grid=(N, num_c),
            in_specs=[
                pl.BlockSpec(memory_space=pltpu.MemorySpace.SMEM),      # w (C,)
                pl.BlockSpec(memory_space=pltpu.MemorySpace.SMEM),      # b (1,1)
                pl.BlockSpec((1, tc, H, W), lambda n, c: (n, c, 0, 0)),  # x
                pl.BlockSpec((Hout, H), lambda n, c: (0, 0)),            # A_h
                pl.BlockSpec((W, Wout), lambda n, c: (0, 0)),            # A_w^T
            ],
            out_specs=pl.BlockSpec((1, Hout, Wout), lambda n, c: (n, 0, 0)),
            scratch_shapes=[pltpu.VMEM((H, W), jnp.float32)],
        ),
        compiler_params=pltpu.CompilerParams(
            dimension_semantics=("parallel", "arbitrary"),
            vmem_limit_bytes=_vmem_limit(needed)),
        cost_estimate=cost,
    )(w_vec, b, x, ah, awt)
    return out.reshape(N, 1, Hout, Wout)


def score_layer(x, weight, bias, x_size=None):
    """x: (N, C, H, W) f32; weight: (1, C, 1, 1); bias: (1,)."""
    N, C, H, W = x.shape
    w = weight.reshape(C).astype(jnp.float32)
    b = bias.reshape(1, 1).astype(jnp.float32)

    if x_size is None:
        Hout, Wout = H, W
    else:
        Hout, Wout = int(x_size[2]), int(x_size[3])

    if Hout == H and Wout == W:
        # No resize (or identity resize): skip interp matmuls entirely.
        return _conv_only(x, w.reshape(1, C), b)
    return _conv_resize(x, w, b, Hout, Wout)


# ----------------------------------------------------------------------------
# Pure-JAX reference
# ----------------------------------------------------------------------------

def _reference(x, weight, bias, x_size=None):
    N, C, H, W = x.shape
    wf = weight.reshape(C).astype(jnp.float32)
    y = jnp.einsum('nchw,c->nhw', x.astype(jnp.float32), wf) + bias[0]
    if x_size is None:
        return y[:, None].astype(x.dtype)
    Hout, Wout = int(x_size[2]), int(x_size[3])
    ah = _interp_matrix(Hout, H)
    aw = _interp_matrix(Wout, W)
    z = jnp.einsum('ph,nhw,qw->npq', ah, y, aw)
    return z[:, None].astype(x.dtype)


if __name__ == "__main__":
    key = jax.random.PRNGKey(0)
    k1, k2, k3, k4, k5 = jax.random.split(key, 5)

    N, C, H, W = 2, 4, 16, 16
    x = jax.random.normal(k1, (N, C, H, W), dtype=jnp.float32)
    # nn.Conv2d(k, 1, 1, 1) parameters (deterministic synthetic init)
    weight = jax.random.normal(k2, (1, C, 1, 1), dtype=jnp.float32) * 0.1
    bias = jax.random.normal(k3, (1,), dtype=jnp.float32) * 0.1

    # 1) conv + bilinear upsample (x_size mimics a PyTorch tensor's .size())
    x_size = (N, 1, 24, 24)
    out_resized = jax.block_until_ready(score_layer(x, weight, bias, x_size))
    ref_resized = _reference(x, weight, bias, x_size)
    assert out_resized.shape == (N, 1, 24, 24)
    assert jnp.allclose(out_resized, ref_resized, atol=1e-4, rtol=1e-4)

    # 2) conv only (x_size=None)
    out_plain = jax.block_until_ready(score_layer(x, weight, bias, None))
    ref_plain = _reference(x, weight, bias, None)
    assert out_plain.shape == (N, 1, H, W)
    assert jnp.allclose(out_plain, ref_plain, atol=1e-4, rtol=1e-4)

    # 3) identity-size x_size routes through the conv-only kernel (no matmuls)
    out_ident = jax.block_until_ready(score_layer(x, weight, bias, (N, 1, H, W)))
    assert jnp.allclose(out_ident, ref_plain, atol=1e-4, rtol=1e-4)

    # 4) exercise the channel-reduction grid axis with a non-divisible last
    #    block (C=6, forced tc=4 -> channel steps of 4 and 2)
    C2 = 6
    x2 = jax.random.normal(k4, (N, C2, H, W), dtype=jnp.float32)
    w2 = jax.random.normal(k5, (1, C2, 1, 1), dtype=jnp.float32) * 0.1
    out_tiled = jax.block_until_ready(
        _conv_resize(x2, w2.reshape(C2), bias.reshape(1, 1), 20, 28,
                     max_block_bytes=4 * 16 * 128 * 4))
    ref_tiled = _reference(x2, w2, bias, (N, 1, 20, 28))
    assert out_tiled.shape == (N, 1, 20, 28)
    assert jnp.allclose(out_tiled, ref_tiled, atol=1e-4, rtol=1e-4)

    # 5) exercise spatial tiling in the conv-only kernel (ts=128 < H*W=256)
    out_sp = jax.block_until_ready(
        _conv_only(x, weight.reshape(1, C), bias.reshape(1, 1),
                   max_block_bytes=2048))
    assert jnp.allclose(out_sp, ref_plain, atol=1e-4, rtol=1e-4)

    print("KERNEL_OK")
</pallas_src>

<mosaic_0001>
module attributes {stable_mosaic.version = 11 : i64} {
  func.func @_resize_kernel(%arg0: i32, %arg1: i32, %arg2: memref<4xf32, #tpu.memory_space<smem>>, %arg3: memref<1x1xf32, #tpu.memory_space<smem>>, %arg4: memref<1x4x16x16xf32, #tpu.memory_space<vmem>>, %arg5: memref<24x16xf32, #tpu.memory_space<vmem>>, %arg6: memref<16x24xf32, #tpu.memory_space<vmem>>, %arg7: memref<1x24x24xf32, #tpu.memory_space<vmem>>, %arg8: memref<16x16xf32, #tpu.memory_space<vmem>>) attributes {dimension_semantics = [#tpu.dimension_semantics<parallel>, #tpu.dimension_semantics<arbitrary>], iteration_bounds = array<i64: 2, 1>, scalar_prefetch = 0 : i64, scratch_operands = 1 : i64, tpu.core_type = #tpu.core_type<tc>, window_params = [{transform_indices = @transform_0, window_bounds = array<i64: 4>}, {transform_indices = @transform_1, window_bounds = array<i64: 1, 1>}, {transform_indices = @transform_2, window_bounds = array<i64: 1, 4, 16, 16>}, {pipeline_mode = #tpu.pipeline_mode<synchronous>, transform_indices = @transform_3, window_bounds = array<i64: 24, 16>}, {pipeline_mode = #tpu.pipeline_mode<synchronous>, transform_indices = @transform_4, window_bounds = array<i64: 16, 24>}, {transform_indices = @transform_5, window_bounds = array<i64: 1, 24, 24>}]} {
    %c0_i32 = arith.constant 0 : i32
    %0 = arith.cmpi eq, %arg1, %c0_i32 : i32
    %1 = arith.extui %0 : i1 to i32
    %c0_i32_0 = arith.constant 0 : i32
    %2 = arith.cmpi ne, %1, %c0_i32_0 : i32
    scf.if %2 {
      %cst = arith.constant 0.000000e+00 : f32
      %11 = vector.broadcast %cst : f32 to vector<16x16xf32>
      %c0 = arith.constant 0 : index
      %c0_7 = arith.constant 0 : index
      %12 = vector.load %arg8[%c0, %c0_7] : memref<16x16xf32, #tpu.memory_space<vmem>>, vector<16x16xf32>
      tpu.vector_store %arg8[%c0, %c0_7], %11 {strides = array<i32>} : memref<16x16xf32, #tpu.memory_space<vmem>>, vector<16x16xf32>,
    } else {
    }
    %c4_i32 = arith.constant 4 : i32
    %3 = arith.muli %arg1, %c4_i32 : i32
    %c4_i32_1 = arith.constant 4 : i32
    %4 = arith.subi %c4_i32_1, %3 : i32
    %c4_i32_2 = arith.constant 4 : i32
    %5 = arith.minsi %c4_i32_2, %4 : i32
    %c0_i32_3 = arith.constant 0 : i32
    %c0_i32_4 = arith.constant 0 : i32
    %6 = arith.subi %5, %c0_i32_4 : i32
    %7 = arith.addi %c0_i32_4, %6 : i32
    %c1_i32 = arith.constant 1 : i32
    scf.for %arg9 = %c0_i32_4 to %7 step %c1_i32  : i32 {
      %c0 = arith.constant 0 : index
      %c0_7 = arith.constant 0 : index
      %11 = vector.load %arg8[%c0, %c0_7] : memref<16x16xf32, #tpu.memory_space<vmem>>, vector<16x16xf32>
      %12 = arith.addi %3, %arg9 : i32
      %13 = arith.index_cast %12 : i32 to index
      %14 = memref.load %arg2[%13] : memref<4xf32, #tpu.memory_space<smem>>
      %c0_8 = arith.constant 0 : index
      %15 = arith.index_cast %arg9 : i32 to index
      %c0_9 = arith.constant 0 : index
      %c0_10 = arith.constant 0 : index
      %16 = vector.load %arg4[%c0_8, %15, %c0_9, %c0_10] : memref<1x4x16x16xf32, #tpu.memory_space<vmem>>, vector<1x1x16x16xf32>
      %17 = vector.shape_cast %16 : vector<1x1x16x16xf32> to vector<16x16xf32>
      %18 = vector.broadcast %14 : f32 to vector<16x16xf32>
      %19 = arith.mulf %18, %17 : vector<16x16xf32>
      %20 = arith.addf %11, %19 : vector<16x16xf32>
      %c0_11 = arith.constant 0 : index
      %c0_12 = arith.constant 0 : index
      %21 = vector.load %arg8[%c0_11, %c0_12] : memref<16x16xf32, #tpu.memory_space<vmem>>, vector<16x16xf32>
      tpu.vector_store %arg8[%c0_11, %c0_12], %20 {strides = array<i32>} : memref<16x16xf32, #tpu.memory_space<vmem>>, vector<16x16xf32>,
    }
    %c0_i32_5 = arith.constant 0 : i32
    %8 = arith.cmpi eq, %arg1, %c0_i32_5 : i32
    %9 = arith.extui %8 : i1 to i32
    %c0_i32_6 = arith.constant 0 : i32
    %10 = arith.cmpi ne, %9, %c0_i32_6 : i32
    scf.if %10 {
      %c0 = arith.constant 0 : index
      %c0_7 = arith.constant 0 : index
      %11 = vector.load %arg5[%c0, %c0_7] : memref<24x16xf32, #tpu.memory_space<vmem>>, vector<24x16xf32>
      %c0_8 = arith.constant 0 : index
      %c0_9 = arith.constant 0 : index
      %12 = vector.load %arg8[%c0_8, %c0_9] : memref<16x16xf32, #tpu.memory_space<vmem>>, vector<16x16xf32>
      %cst = arith.constant dense<0.000000e+00> : vector<24x16xf32>
      %13 = tpu.matmul %11, %12, %cst {dimension_numbers = #tpu.dot_dimension_numbers<[1], [0], [0], [1], [0, 0, 1, 1], [], []>} : vector<24x16xf32>, vector<16x16xf32>, vector<24x16xf32> -> vector<24x16xf32>
      %c0_10 = arith.constant 0 : index
      %c0_11 = arith.constant 0 : index
      %14 = vector.load %arg6[%c0_10, %c0_11] : memref<16x24xf32, #tpu.memory_space<vmem>>, vector<16x24xf32>
      %cst_12 = arith.constant dense<0.000000e+00> : vector<24x24xf32>
      %15 = tpu.matmul %13, %14, %cst_12 {dimension_numbers = #tpu.dot_dimension_numbers<[1], [0], [0], [1], [0, 0, 1, 1], [], []>} : vector<24x16xf32>, vector<16x24xf32>, vector<24x24xf32> -> vector<24x24xf32>
      %c0_13 = arith.constant 0 : index
      %c0_14 = arith.constant 0 : index
      %16 = memref.load %arg3[%c0_13, %c0_14] : memref<1x1xf32, #tpu.memory_space<smem>>
      %17 = vector.broadcast %16 : f32 to vector<24x24xf32>
      %18 = arith.addf %15, %17 : vector<24x24xf32>
      %c0_15 = arith.constant 0 : index
      %c0_16 = arith.constant 0 : index
      %c0_17 = arith.constant 0 : index
      %19 = vector.load %arg7[%c0_15, %c0_16, %c0_17] : memref<1x24x24xf32, #tpu.memory_space<vmem>>, vector<1x24x24xf32>
      %20 = vector.shape_cast %19 : vector<1x24x24xf32> to vector<24x24xf32>
      %21 = vector.shape_cast %18 : vector<24x24xf32> to vector<1x24x24xf32>
      tpu.vector_store %arg7[%c0_15, %c0_16, %c0_17], %21 {strides = array<i32>} : memref<1x24x24xf32, #tpu.memory_space<vmem>>, vector<1x24x24xf32>,
    } else {
    }
    return
  }
  func.func @transform_0(%arg0: i32, %arg1: i32) -> i32 {
    %c0_i32 = arith.constant 0 : i32
    %c0_i32_0 = arith.constant 0 : i32
    return %c0_i32 : i32
  }
  func.func @transform_1(%arg0: i32, %arg1: i32) -> (i32, i32) {
    %c0_i32 = arith.constant 0 : i32
    %c0_i32_0 = arith.constant 0 : i32
    %c0_i32_1 = arith.constant 0 : i32
    return %c0_i32, %c0_i32_0 : i32, i32
  }
  func.func @transform_2(%arg0: i32, %arg1: i32) -> (i32, i32, i32, i32) {
    %c0_i32 = arith.constant 0 : i32
    %c0_i32_0 = arith.constant 0 : i32
    %c0_i32_1 = arith.constant 0 : i32
    return %arg0, %arg1, %c0_i32, %c0_i32_0 : i32, i32, i32, i32
  }
  func.func @transform_3(%arg0: i32, %arg1: i32) -> (i32, i32) {
    %c0_i32 = arith.constant 0 : i32
    %c0_i32_0 = arith.constant 0 : i32
    %c0_i32_1 = arith.constant 0 : i32
    return %c0_i32, %c0_i32_0 : i32, i32
  }
  func.func @transform_4(%arg0: i32, %arg1: i32) -> (i32, i32) {
    %c0_i32 = arith.constant 0 : i32
    %c0_i32_0 = arith.constant 0 : i32
    %c0_i32_1 = arith.constant 0 : i32
    return %c0_i32, %c0_i32_0 : i32, i32
  }
  func.func @transform_5(%arg0: i32, %arg1: i32) -> (i32, i32, i32) {
    %c0_i32 = arith.constant 0 : i32
    %c0_i32_0 = arith.constant 0 : i32
    %c0_i32_1 = arith.constant 0 : i32
    return %arg0, %c0_i32, %c0_i32_0 : i32, i32, i32
  }
}

</mosaic_0001>

<bundles_post_ra>
// kernel: tpu_custom_call.1
= control target key start
LH: loop header
LB: loop body
LE: loop exit
PB: predicated region body
PF: predicated region fallthrough
CT: control target
= control target key end

     0   :  { %s1171_s0 = inlined_call_operand.vmem [shape: f32[4], index: 0, kind: input, shape index: {}]   ;;  %s1172_s1 = inlined_call_operand.<no memory space> [shape: f32[1,1], index: 1, kind: input, shape index: {}]   ;;  %s1173_s2 = inlined_call_operand.hbm [shape: f32[2,4,16,16], index: 2, kind: input, shape index: {}]   ;;  %s1174_s3 = inlined_call_operand.vmem [shape: f32[24,16], index: 3, kind: input, shape index: {}]   ;;  %s1175_s4 = inlined_call_operand.vmem [shape: f32[16,24], index: 4, kind: input, shape index: {}]   ;;  %s1176_s5 = inlined_call_operand.hbm [shape: f32[2,24,24], index: 5, kind: output, shape index: {}]  }
   0x1   :  { %1180 = sst [smem:[#allocation14_spill]] %s1171_s0 }
   0x2   :  { %10 = sst [smem:[#allocation3]] %s1172_s1 }
   0x3   :  { %11 = vsyncpa [#allocation7], 0 }
   0x4   :  { %12 = vsyncpa [#allocation5], 0 }
   0x5   :  { %14 = vsyncpa [#allocation5 + $0x1], 0 }
   0x6   :  { %15 = vsyncpa [#allocation6], 0 }
   0x7   :  { %17 = vsyncpa [#allocation6 + $0x1], 0  ;;  %s947_s20 = smov 0   ;;  %s949_s21 = smov 0  }
   0x8   :  { %s951_s22 = smov 0   ;;  %s953_s23 = smov 0  }
   0x9   :  { %s955_s24 = smov 0   ;;  %s957_s25 = smov 0  }
   0xa LB: > { %1181 = sst [smem:[#allocation13_spill]] %s899_s25  ;;  %s621_s1 = sadd.s32 4294967295, %s899_s25   ;;  %s899_s25 = sphi %s957_s25, %s23_s25   ;;  %s895_s24 = sphi %s955_s24, %s1200_s24   ;;  %s891_s23 = sphi %s953_s23, %s1199_s23   ;;  %s887_s22 = sphi %s951_s22, %s1198_s22   ;;  %s883_s21 = sphi %s949_s21, %s1197_s21   ;;  %s879_s20 = sphi %s947_s20, %s1196_s20  }
   0xb   : > { %s622_s26 = sadd.s32 4294967294, %s899_s25   ;;  %s86_s27 = sadd.s32 1, %s887_s22 }
   0xc   : > { %p93_p0 = scmp.ne.s32.totalorder %s887_s22, %s883_s21  ;;  %p94_p1 = scmp.eq.s32.totalorder %s899_s25, 0 }
   0xd   : > { %p99_p2 = scmp.ne.s32.totalorder %s883_s21, %s879_s20  ;;  %p985_p3 = scmp.eq.s32.totalorder %s621_s1, 0 }
   0xe   : > { %p165_p4 = scmp.eq.s32.totalorder %s621_s1, 1  ;;  %p989_p5 = por %p94_p1, %p93_p0 }
   0xf   : > { %p171_p6 = scmp.eq.s32.totalorder %s622_s26, 1  ;;  %p995_p7 = por %p985_p3, %p99_p2 }
  0x10   : > { %p999_p8 = por %p165_p4, %p93_p0  ;;  %p623_p10 = scmp.ge.s32.totalorder %s899_s25, 1 }
  0x11   : > { %p1003_p9 = por %p171_p6, %p99_p2  ;;  %p178_p11 = scmp.lt.s32.totalorder %s899_s25, 3 }
  0x12   : > { %s1185_s6 = scalar_select %p999_p8, 1, 0 }
  0x13   : > { %s1186_s7 = scalar_select %p1003_p9, 1, 0 }
  0x14   : > { %s1187_s0 = sld [smem:[#allocation14_spill]]  ;;  %p1012_p12 = pnand %p623_p10, %p178_p11 }
  0x15   : > { %p702_p0 = scmp.lt.s32.totalorder %s899_s25, 2  ;;  %s35_s14 = sadd.s32 1, %s895_s24 }
  0x16   : > { %p689_p1 = pneg %p1012_p12  ;;  %p1033_p6 = scmp.ge.s32.totalorder %s35_s14, 2 }
  0x17   : > { %p1022_p2 = pnand %p702_p0, %p989_p5  ;;  %s211_s16 = sand.u32 1, %s887_s22  }
  0x18   : > { %p1028_p4 = pnand %p689_p1, %p985_p3 }
  0x1a   : > { %s191_s10 = sshll.u32 %s1187_s0, 4  ;;  %p770_p11 = pneg %p1028_p4  ;;  %s192_s10 = int_to_ptr.vmem [resolvable:$true] %s191_s10 }
  0x1b   : > { %s768_s17 = scalar_lea.vmem %s192_s10, 16  ;;  %p776_p13 = scmp.lt.s32.totalorder %s192_s10, %s192_s10 }
  0x1c   : > { %p769_p10 = scmp.ne.s32.totalorder %s192_s10, %s768_s17  ;;  %p777_p9 = scmp.lt.s32.totalorder %s768_s17, %s768_s17 }
  0x1e   : > { %p771_p5 = pnand %p770_p11, %p769_p10  ;;  %p778_p8 = por %p777_p9, %p776_p13 }
  0x20   : > { %p772_p0 = pneg %p771_p5 }
  0x22   : > { %p779_p1 = pnand %p778_p8, %p772_p0 }
  0x24   : > { %782 = shalt.err (!%p779_p1)
}
  0x25   : > { %s905_s18 = smov [#allocation4]   ;;  %s1202_s14 = smov (%p1033_p6, %s35_s14), 0 }
  0x26   : > { %692 = dma.vmem_to_smem (!%p1028_p4), %s192_s10, 16, %s905_s18, [#allocation7]  }
  0x27   : > { %s626_s19 = sshll.u32 %s211_s16, 6  ;;  %s81_s1 = ssub.s32 %s895_s24, %s1202_s14 }
  0x28   : > { %p84_p10 = scmp.eq.s32.totalorder %s81_s1, 0  ;;  %s642_s26 = sshll.u32 %s895_s24, 10 }
  0x29   : > { %s224_s9 = scalar_lea.hbm %s1173_s2, %s642_s26  ;;  %s215_s13 = scalar_lea.vmem [#allocation8], %s626_s19 }
  0x2a   : > { %s225_s17 = sshll.u32 %s215_s13, 4  ;;  %s212_s25 = scalar_lea.sflag [#allocation5], %s211_s16  ;;  %s226_s17 = int_to_ptr.vmem [resolvable:$true] %s225_s17 }
  0x2b   : > { %s1055_s0 = scalar_select %p84_p10, %s887_s22, %s86_s27  }
  0x2c   : > { %p785_p8 = pneg %p1022_p2  ;;  %s796_s10 = scalar_lea.vmem %s226_s17, 1024 }
  0x2d   : > { %p797_p9 = scmp.ne.s32.totalorder %s226_s17, %s796_s10  ;;  %s906_s15 = smov [#allocation8]  }
  0x2e   : > { %s801_s18 = sshll.u32 %s906_s15, 4  ;;  %s802_s18 = int_to_ptr.vmem [resolvable:$false] %s801_s18 }
  0x2f   : > { %p799_p13 = pnand %p797_p9, %p785_p8  ;;  %s803_s1 = scalar_lea.vmem %s802_s18, 2048 }
  0x30   : > { %p804_p6 = scmp.lt.s32.totalorder %s226_s17, %s802_s18  ;;  %p805_p11 = scmp.lt.s32.totalorder %s803_s1, %s796_s10 }
  0x31   : > { %p800_p4 = pneg %p799_p13 }
  0x32   : > { %p806_p5 = por %p805_p11, %p804_p6 }
  0x34   : > { %p807_p0 = pnand %p806_p5, %p800_p4 }
  0x36   : > { %810 = shalt.err (!%p807_p0)
}
  0x37   : > { %s907_s19 = smov 128   ;;  %s908_s27 = smov 8  }
  0x38   : > { %696 = dma.hbm_to_vmem [thread:$0]  (!%p1022_p2), %s224_s9, 1024, %s226_s17, %s212_s25, %s907_s19, %s907_s19, %s908_s27  }
  0x39   : > { %237 = sbr.rel (%p1012_p12) target bundleno = 504 (0x1f8), region = 40 }
  0x3e   : > { %866 = dma.done.wait (%p985_p3), [#allocation7], 16  }
  0x3f   : > { %868 = vsyncadd (%p985_p3), [#allocation7], 4294967280  ;;  %s1068_s16 = sand.u32 1, %s883_s21  }
  0x40   : > { %s631_s26 = sshll.u32 %s1068_s16, 6  ;;  %s244_s29 = scalar_lea.sflag [#allocation5], %s1068_s16 }
  0x41   : > { %s1072_s8 = scalar_lea.vmem [#allocation8], %s631_s26 }
  0x42   : > { %870 = dma.done.wait (%p995_p7), %s244_s29, 1024  }
  0x43   : > { %872 = vsyncadd (%p995_p7), %s244_s29, 4294966272 }
  0x44   : > { %252 = sfence }
  0x45   : > { %s679_s25 = smul.u32 24, %s1068_s16  ;;  %vm280_vm0 = vcmask 130048   ;;  %v909_v0 = vmov 0.0   ;;  %s901_s11 = smov 0  }
  0x46   : > { %281 = vst.msk [vmem:[#allocation2] sm:$0xff] %vm280_vm0, %v909_v0  ;;  %282 = vst.msk [vmem:[#allocation2 + $0x8] sm:$0xff] %vm280_vm0, %v909_v0 }
  0x47   : > { %s1081_s28 = scalar_lea.vmem [#allocation9], %s679_s25 }
  0x48 LB: >> { %s296_s12 = sld [smem:[#allocation4 + %s903_s11]]  ;;  %s632_s9 = sshll.u32 %s903_s11, 4  ;;  %s903_s11 = sphi %s901_s11, %s290_s11  }
  0x49   : >> { %s298_s30 = scalar_lea.vmem %s1072_s8, %s632_s9 [#allocation8]  ;;  %s290_s11 = sadd.s32 1, %s903_s11  }
  0x4a   : >> { %v299_v1 = vld [vmem:[%s298_s30] sm:$0xff]  ;;  %v300_v2 = vld [vmem:[%s298_s30 + $0x8] sm:$0xff]  ;;  %p289_p3 = scmp.ge.s32.totalorder %s290_s11, 4 }
  0x4b   : > { %653 = vmatprep.subr.mxu0 (%p289_p3), %v909_v0  ;;  %666 = vmatprep.subr.mxu1 (%p289_p3), %v909_v0  ;;  %vm910_vm1 = vmmov (%p289_p3), 0   ;;  %v312_v12 = vld [vmem:[%s1174_s3] sm:$0xff] (%p289_p3)  ;;  %v408_v13 = vld [vmem:[%s1175_s4 + $0x8] sm:$0xff] (%p289_p3)  ;;  %v314_v15 = vld [vmem:[%s1174_s3 + $0x10] sm:$0xff] (%p289_p3)  ;;  %s409_s8 = sld [smem:[#allocation3]] (%p289_p3)  ;;  %vm500_vm2 = vcmask (%p289_p3), 195584  }
  0x4c   : > { %657 = vmatprep.mubr.msk.f32.mxu0 (%p289_p3), %vm910_vm1, %v909_v0  ;;  %667 = vmatpush3.msra.mxu1 (%p289_p3), %v408_v13  ;;  %v313_v14 = vld [vmem:[%s1174_s3 + $0x8] sm:$0xff] (%p289_p3)  ;;  %v407_v16 = vld [vmem:[%s1175_s4] sm:$0xff] (%p289_p3)  ;;  %s680_s25 = smul.u32 (%p289_p3), 384, %s891_s23  ;;  %s518_s11 = sshll.u32 (%p289_p3), %s1081_s28, 4  ;;  %s1122_s11 = int_to_ptr.vmem [resolvable:$true] %s518_s11 }
  0x4d   : >> { %v293_v3 = vld [vmem:[#allocation2] sm:$0xff]  ;;  %v294_v5 = vld [vmem:[#allocation2 + $0x8] sm:$0xff]  ;;  %668 = vmatprep.subr.mxu1 (%p289_p3), %v909_v0  ;;  %670 = vmatprep.mubr.msk.f32.mxu1 (%p289_p3), %vm910_vm1, %v909_v0  ;;  %s505_s13 = scalar_lea.sflag (%p289_p3), [#allocation6], %s1068_s16  ;;  %s811_s23 = scalar_lea.vmem (%p289_p3), %s1122_s11, 384 }
  0x4e   : >> { %v301_v4 = vstv %s296_s12  ;;  %669 = vmatpush3.msra.mxu1 (%p289_p3), %v407_v16  ;;  %s1120_s30 = scalar_lea.hbm (%p289_p3), %s1176_s5, %s680_s25  ;;  %p812_p7 = scmp.ne.s32.totalorder (%p289_p3), %s1122_s11, %s811_s23 }
  0x4f   : >> { %v302_v6 = vmul.f32 %v301_v4, %v299_v1  ;;  %v303_v7 = vmul.f32 %v301_v4, %v300_v2  ;;  %292 = sbr.rel (!%p289_p3) target bundleno = 72 (0x48), region = 106  ;;  %p1192_p12 = scmp.ne.s32.totalorder (%p289_p3), %s1185_s6, 0 }
  0x50   : > { %s911_s17 = smov (%p289_p3), [#allocation9]  }
  0x51   : >> { %v304_v8 = vadd.f32 %v302_v6, %v293_v3  ;;  %v305_v9 = vadd.f32 %v303_v7, %v294_v5  ;;  %v410_v23 = vstv (%p289_p3), %s409_s8  ;;  %p813_p2 = pnand (%p289_p3), %p812_p7, %p1192_p12  ;;  %s815_s10 = sshll.u32 (%p289_p3), %s911_s17, 4  ;;  %s816_s10 = int_to_ptr.vmem [resolvable:$false] %s815_s10 }
  0x52   : > { %s817_s15 = scalar_lea.vmem (%p289_p3), %s816_s10, 768  ;;  %p818_p10 = scmp.lt.s32.totalorder (%p289_p3), %s1122_s11, %s816_s10 }
  0x53   : >> { %307 = vst.msk [vmem:[#allocation2] sm:$0xff] %vm280_vm0, %v304_v8  ;;  %308 = vst.msk [vmem:[#allocation2 + $0x8] sm:$0xff] %vm280_vm0, %v305_v9  ;;  %p814_p1 = pneg (%p289_p3), %p813_p2  ;;  %p819_p8 = scmp.lt.s32.totalorder (%p289_p3), %s817_s15, %s811_s23 }
  0x55   : > { %p820_p9 = por %p819_p8, %p818_p10 }
  0x57   : > { %p821_p13 = pnand %p820_p9, %p814_p1 }
  0x5a   : > { %v316_v10 = vld [vmem:[#allocation2 + $0x8] sm:$0xff]  ;;  %v315_v11 = vld [vmem:[#allocation2] sm:$0xff] }
  0x5b   : > { %654 = vmatpush3.msra.mxu0 %v316_v10 }
  0x5c   : > { %655 = vmatprep.subr.mxu0 %v909_v0 }
  0x5d   : > { %656 = vmatpush3.msra.mxu0 %v315_v11 }
  0x5e   : > { %658 = vmatmul.mubr.msk.f32.vlgmr.msra.gmra.mxu0 %vm280_vm0, %v312_v12 }
  0x5f   : > { %660 = vmatprep.mubr.msk.f32.mxu0 %vm910_vm1, %v909_v0 }
  0x62   : > { %661 = vmatmul.mubr.msk.f32.gmra.mxu0 %vm280_vm0, %v313_v14 }
  0x63   : > { %663 = vmatprep.mubr.msk.f32.mxu0 %vm910_vm1, %v909_v0 }
  0x66   : > { %664 = vmatmul.mubr.msk.f32.gmra.mxu0 %vm280_vm0, %v314_v15 }
 0x11e   : > { %v393_v17 = vpop.f32.mrf.mxu0 }
 0x11f   : > { %671 = vmatmul.mubr.msk.f32.vlgmr.msra.gmra.mxu1 %vm280_vm0, %v393_v17 }
 0x120   : > { %v659_v18 = vpop.f32.mrf.mxu0  ;;  %673 = vmatprep.mubr.msk.f32.mxu1 %vm910_vm1, %v909_v0 }
 0x122   : > { %v398_v19 = vpop.f32.mrf.mxu0 }
 0x123   : > { %674 = vmatmul.mubr.msk.f32.gmra.mxu1 %vm280_vm0, %v398_v19 }
 0x124   : > { %v662_v20 = vpop.f32.mrf.mxu0  ;;  %676 = vmatprep.mubr.msk.f32.mxu1 %vm910_vm1, %v909_v0 }
 0x126   : > { %v403_v21 = vpop.f32.mrf.mxu0 }
 0x127   : > { %677 = vmatmul.mubr.msk.f32.gmra.mxu1 %vm280_vm0, %v403_v21 }
 0x128   : > { %v665_v22 = vpop.f32.mrf.mxu0 }
 0x1df   : > { %v486_v24 = vpop.f32.mrf.mxu1 }
 0x1e0   : > { %v487_v25 = vadd.f32 %v486_v24, %v410_v23 }
 0x1e1   : > { %v672_v26 = vpop.f32.mrf.mxu1 }
 0x1e2   : > { %501 = vst.msk [vmem:[%s1081_s28] sm:$0xff] %vm500_vm2, %v487_v25 }
 0x1e3   : > { %v491_v27 = vpop.f32.mrf.mxu1 }
 0x1e4   : > { %v492_v28 = vadd.f32 %v491_v27, %v410_v23 }
 0x1e5   : > { %v675_v29 = vpop.f32.mrf.mxu1 }
 0x1e6   : > { %502 = vst.msk [vmem:[%s1081_s28 + $0x8] sm:$0xff] %vm500_vm2, %v492_v28 }
 0x1e7   : > { %v496_v30 = vpop.f32.mrf.mxu1 }
 0x1e8   : > { %v497_v31 = vadd.f32 %v496_v30, %v410_v23 }
 0x1e9   : > { %v678_v32 = vpop.f32.mrf.mxu1 }
 0x1ea   : > { %503 = vst.msk [vmem:[%s1081_s28 + $0x10] sm:$0xff] %vm500_vm2, %v497_v31 }
 0x1eb   : > { %824 = shalt.err (!%p821_p13)
}
 0x1ec   : > { %s825_s28 = scalar_lea.hbm %s1120_s30, 384  ;;  %s829_s19 = scalar_lea.hbm %s1176_s5, 768 }
 0x1ed   : > { %p826_p4 = scmp.ne.s32.totalorder %s1120_s30, %s825_s28  ;;  %p830_p5 = scmp.lt.s32.totalorder %s1120_s30, %s1176_s5 }
 0x1ee   : > { %p831_p0 = scmp.lt.s32.totalorder %s829_s19, %s825_s28 }
 0x1ef   : > { %p827_p6 = pnand %p826_p4, %p1192_p12 }
 0x1f0   : > { %p832_p3 = por %p831_p0, %p830_p5 }
 0x1f1   : > { %p828_p11 = pneg %p827_p6 }
 0x1f3   : > { %p833_p7 = pnand %p832_p3, %p828_p11 }
 0x1f5   : > { %836 = shalt.err (!%p833_p7)
}
 0x1f6   : > { %s912_s29 = smov 128   ;;  %s913_s8 = smov 8  }
 0x1f7   : > { %687 = dma.vmem_to_hbm [thread:$0]  (%p1192_p12), %s1122_s11, 384, %s1120_s30, %s505_s13, %s912_s29, %s912_s29, %s913_s8  }
 0x1f8 PF: > { %s1193_s25 = sld [smem:[#allocation13_spill]]  ;;  %s533_s12 = sand.u32 1, %s879_s20  }
 0x1f9   : > { %p1194_p2 = scmp.ne.s32.totalorder %s1186_s7, 0  ;;  %s534_s9 = scalar_lea.sflag [#allocation6], %s533_s12 }
 0x1fe   : > { %p1195_p1 = scmp.ge.s32.totalorder %s1193_s25, 2 }
 0x200   : > { %p698_p10 = pnand %p1195_p1, %p1194_p2 }
 0x202   : > { %p699_p8 = pneg %p698_p10 }
 0x204   : > { %874 = dma.done.wait (%p699_p8), %s534_s9, 384  }
 0x205   : > { %876 = vsyncadd (%p699_p8), %s534_s9, 4294966912  ;;  %s23_s25 = sadd.s32 1, %s1193_s25   ;;  %s1196_s20 = smov %s883_s21 }
 0x206   : > { %p20_p9 = scmp.ge.s32.totalorder %s23_s25, 4   ;;  %s1197_s21 = smov %s887_s22 }
 0x207   : > { %s1198_s22 = smov %s1055_s0  ;;  %s1199_s23 = smov %s895_s24 }
 0x208   : > { %s1200_s24 = smov %s1202_s14  ;;  %22 = sbr.rel (!%p20_p9) target bundleno = 10 (0xa), region = 117 }
 0x20d   :  { %539 = vsyncpa [#allocation5], 1 }
 0x20e   :  { %541 = vsyncpa [#allocation5 + $0x1], 1 }
 0x20f   :  { %542 = vsyncpa [#allocation6], 1 }
 0x210   :  { %544 = vsyncpa [#allocation6 + $0x1], 1 }
 0x211   :  { %545 = vsyncpa [#allocation7], 1 }
 0x212   :  { %547 = vsyncpa [#allocation7 + $0x1], 1 }

</bundles_post_ra>
